<compile_context>
chip_gen: v6e
topology: v6e:2x2x1
jax: 0.10.0
libtpu: 0.0.40
codegen_flags: <defaults>
</compile_context>

<pallas_src>
import functools

import jax
import jax.numpy as jnp
from jax.experimental import pallas as pl
from jax.experimental.pallas import tpu as pltpu


def make_pe_table(d_model: int, max_len: int = 100) -> jnp.ndarray:
    """Deterministic sinusoidal table, same formula as the PyTorch __init__."""
    pos = jnp.arange(0, max_len, dtype=jnp.float32).reshape(-1, 1)          # (L, 1)
    angle = jnp.power(
        10000.0, jnp.arange(0, d_model, 2, dtype=jnp.float32) / d_model)    # (D/2,)
    pe = jnp.zeros((max_len, d_model), dtype=jnp.float32)
    pe = pe.at[:, 0::2].set(jnp.sin(pos / angle))
    pe = pe.at[:, 1::2].set(jnp.cos(pos / angle))
    return pe


# ---------------------------------------------------------------------------
# Kernels: (BT, TS, D) blocks of x / mask / out, (TS, D) block of pe.
# Math is done in f32 vregs and cast at the store, so bf16 x/out is supported.
# ---------------------------------------------------------------------------
def _pe_kernel(x_ref, pe_ref, o_ref):
    y = x_ref[...].astype(jnp.float32) + pe_ref[...][None, :, :]
    o_ref[...] = y.astype(o_ref.dtype)


def _pe_dropout_kernel(x_ref, pe_ref, mask_ref, o_ref):
    y = x_ref[...].astype(jnp.float32) + pe_ref[...][None, :, :]
    # mask already carries the 1/(1-p) inverted-dropout scale (0 where dropped).
    y = y * mask_ref[...].astype(jnp.float32)
    o_ref[...] = y.astype(o_ref.dtype)


# ---------------------------------------------------------------------------
# Tile selection: biggest legal block <= ~2 MiB per buffer.
#   - TS: largest divisor of S that is a multiple of 8 (or S itself) whose
#     (TS, D) slab fits the budget -> obeys the (8, 128)/full-dim rule and
#     keeps double-buffered in+mask+out well under scoped VMEM on v5e/v6e/v7x.
#   - BT: if the whole sequence fits in one tile, fold batch elements into the
#     block so tiny problems aren't dominated by the ~0.35 us per-step cost.
# ---------------------------------------------------------------------------
def _choose_tiles(B: int, S: int, D: int, itemsize: int,
                  target_bytes: int = 2 * 1024 * 1024):
    def divisors_desc(n):
        return [d for d in range(n, 0, -1) if n % d == 0]

    row_bytes = D * itemsize
    TS = S
    if S * row_bytes > target_bytes:
        cands = [d for d in divisors_desc(S) if d * row_bytes <= target_bytes]
        pref = [d for d in cands if d % 8 == 0]
        if pref:
            TS = pref[0]
        # else: keep TS = S (full dim is always a legal block shape).

    BT = 1
    if TS == S:
        for d in divisors_desc(B):
            if d * S * row_bytes <= target_bytes:
                BT = d
                break
    return BT, TS


def positional_encoding(x: jnp.ndarray,
                        pe_table: jnp.ndarray,
                        *,
                        dropout_p: float = 0.1,
                        training: bool = True,
                        rng_key=None) -> jnp.ndarray:
    """x: (B, S, D).  pe_table: (max_len, D) float32."""
    B, S, D = x.shape
    pe = pe_table[:S, :].astype(jnp.float32)              # (S, D) slice, plain-JAX glue

    itemsize = jnp.dtype(x.dtype).itemsize
    BT, TS = _choose_tiles(B, S, D, itemsize)
    grid = (B // BT, S // TS)

    x_spec = pl.BlockSpec((BT, TS, D), lambda b, s: (b, s, 0))
    pe_spec = pl.BlockSpec((TS, D), lambda b, s: (s, 0))
    out_spec = pl.BlockSpec((BT, TS, D), lambda b, s: (b, s, 0))

    use_dropout = bool(training) and float(dropout_p) > 0.0
    if use_dropout:
        if rng_key is None:
            rng_key = jax.random.PRNGKey(0)
        keep = jax.random.bernoulli(rng_key, 1.0 - float(dropout_p), (B, S, D))
        scale = jnp.float32(1.0 / (1.0 - float(dropout_p)))
        mask = (keep.astype(jnp.float32) * scale).astype(x.dtype)
        kernel = _pe_dropout_kernel
        in_specs = [x_spec, pe_spec, x_spec]               # mask tiled like x
        args = (x, pe, mask)
    else:
        kernel = _pe_kernel
        in_specs = [x_spec, pe_spec]
        args = (x, pe)

    return pl.pallas_call(
        kernel,
        out_shape=jax.ShapeDtypeStruct((B, S, D), x.dtype),
        grid_spec=pltpu.PrefetchScalarGridSpec(
            num_scalar_prefetch=0,
            grid=grid,
            in_specs=in_specs,
            out_specs=out_spec,
        ),
        compiler_params=pltpu.CompilerParams(
            # Pure element-wise op, no cross-step state -> both axes parallel
            # (lets v7x split the grid over its two TensorCores).
            dimension_semantics=("parallel", "parallel")),
    )(*args)


if __name__ == "__main__":
    B, S, D = 2, 8, 32
    key = jax.random.PRNGKey(0)
    kx, kdrop = jax.random.split(key)
    x = jax.random.normal(kx, (B, S, D), dtype=jnp.float32)

    pe_table = make_pe_table(d_model=D, max_len=100)

    # Training-mode forward (dropout mask applied inside the kernel).
    out_train = positional_encoding(x, pe_table, dropout_p=0.1,
                                    training=True, rng_key=kdrop)
    out_train = jax.block_until_ready(out_train)
    assert out_train.shape == (B, S, D) and out_train.dtype == x.dtype

    # Eval-mode forward (dropout is identity) — exact check vs plain JAX.
    out_eval = positional_encoding(x, pe_table, dropout_p=0.1, training=False)
    out_eval = jax.block_until_ready(out_eval)
    ref_eval = x + pe_table[None, :S, :]
    assert jnp.allclose(out_eval, ref_eval, atol=1e-6), "eval-mode mismatch"

    # Train-mode sanity: every element is either 0 or (x+pe)/(1-p).
    ref_scaled = ref_eval / (1.0 - 0.1)
    ok = jnp.isclose(out_train, 0.0, atol=1e-6) | jnp.isclose(
        out_train, ref_scaled, atol=1e-5)
    assert bool(jnp.all(ok)), "train-mode dropout mismatch"

    print("KERNEL_OK")
</pallas_src>

<mosaic_0001>
module attributes {stable_mosaic.version = 11 : i64} {
  func.func @_pe_dropout_kernel(%arg0: i32, %arg1: i32, %arg2: memref<2x8x32xf32, #tpu.memory_space<vmem>>, %arg3: memref<8x32xf32, #tpu.memory_space<vmem>>, %arg4: memref<2x8x32xf32, #tpu.memory_space<vmem>>, %arg5: memref<2x8x32xf32, #tpu.memory_space<vmem>>) attributes {dimension_semantics = [#tpu.dimension_semantics<parallel>, #tpu.dimension_semantics<parallel>], iteration_bounds = array<i64: 1, 1>, scalar_prefetch = 0 : i64, scratch_operands = 0 : i64, tpu.core_type = #tpu.core_type<tc>, window_params = [{transform_indices = @transform_0, window_bounds = array<i64: 2, 8, 32>}, {transform_indices = @transform_1, window_bounds = array<i64: 8, 32>}, {transform_indices = @transform_2, window_bounds = array<i64: 2, 8, 32>}, {transform_indices = @transform_3, window_bounds = array<i64: 2, 8, 32>}]} {
    %c0 = arith.constant 0 : index
    %c0_0 = arith.constant 0 : index
    %c0_1 = arith.constant 0 : index
    %0 = vector.load %arg2[%c0, %c0_0, %c0_1] : memref<2x8x32xf32, #tpu.memory_space<vmem>>, vector<2x8x32xf32>
    %c0_2 = arith.constant 0 : index
    %c0_3 = arith.constant 0 : index
    %1 = vector.load %arg3[%c0_2, %c0_3] : memref<8x32xf32, #tpu.memory_space<vmem>>, vector<8x32xf32>
    %2 = vector.shape_cast %1 : vector<8x32xf32> to vector<1x8x32xf32>
    %3 = vector.broadcast %2 : vector<1x8x32xf32> to vector<2x8x32xf32>
    %4 = arith.addf %0, %3 : vector<2x8x32xf32>
    %c0_4 = arith.constant 0 : index
    %c0_5 = arith.constant 0 : index
    %c0_6 = arith.constant 0 : index
    %5 = vector.load %arg4[%c0_4, %c0_5, %c0_6] : memref<2x8x32xf32, #tpu.memory_space<vmem>>, vector<2x8x32xf32>
    %6 = arith.mulf %4, %5 : vector<2x8x32xf32>
    %c0_7 = arith.constant 0 : index
    %c0_8 = arith.constant 0 : index
    %c0_9 = arith.constant 0 : index
    %7 = vector.load %arg5[%c0_7, %c0_8, %c0_9] : memref<2x8x32xf32, #tpu.memory_space<vmem>>, vector<2x8x32xf32>
    tpu.vector_store %arg5[%c0_7, %c0_8, %c0_9], %6 {strides = array<i32>} : memref<2x8x32xf32, #tpu.memory_space<vmem>>, vector<2x8x32xf32>,
    return
  }
  func.func @transform_0(%arg0: i32, %arg1: i32) -> (i32, i32, i32) {
    %c0_i32 = arith.constant 0 : i32
    %c0_i32_0 = arith.constant 0 : i32
    return %arg0, %arg1, %c0_i32 : i32, i32, i32
  }
  func.func @transform_1(%arg0: i32, %arg1: i32) -> (i32, i32) {
    %c0_i32 = arith.constant 0 : i32
    %c0_i32_0 = arith.constant 0 : i32
    return %arg1, %c0_i32 : i32, i32
  }
  func.func @transform_2(%arg0: i32, %arg1: i32) -> (i32, i32, i32) {
    %c0_i32 = arith.constant 0 : i32
    %c0_i32_0 = arith.constant 0 : i32
    return %arg0, %arg1, %c0_i32 : i32, i32, i32
  }
  func.func @transform_3(%arg0: i32, %arg1: i32) -> (i32, i32, i32) {
    %c0_i32 = arith.constant 0 : i32
    %c0_i32_0 = arith.constant 0 : i32
    return %arg0, %arg1, %c0_i32 : i32, i32, i32
  }
}

</mosaic_0001>

<bundles_post_ra>
// kernel: tpu_custom_call.1
= control target key start
LH: loop header
LB: loop body
LE: loop exit
PB: predicated region body
PF: predicated region fallthrough
CT: control target
= control target key end

     0   :  { %8 = vsyncpa [#allocation3], 0  ;;  %s223_s0 = inlined_call_operand.hbm [shape: f32[2,8,32], index: 0, kind: input, shape index: {}]   ;;  %s224_s1 = inlined_call_operand.hbm [shape: f32[8,32], index: 1, kind: input, shape index: {}]   ;;  %s225_s2 = inlined_call_operand.hbm [shape: f32[2,8,32], index: 2, kind: input, shape index: {}]   ;;  %s226_s3 = inlined_call_operand.hbm [shape: f32[2,8,32], index: 3, kind: output, shape index: {}]  }
   0x1   :  { %9 = vsyncpa [#allocation6], 0 }
   0x2   :  { %10 = vsyncpa [#allocation4], 0  ;;  %s176_s12 = smov [#allocation5]   ;;  %s177_s14 = smov [#allocation2]  }
   0x3   :  { %s29_s13 = sshll.u32 %s176_s12, 4  ;;  %s16_s15 = sshll.u32 %s177_s14, 4  ;;  %s30_s13 = int_to_ptr.vmem [resolvable:$true] %s29_s13  ;;  %s17_s15 = int_to_ptr.vmem [resolvable:$true] %s16_s15 }
   0x4   :  { %s98_s16 = scalar_lea.vmem %s30_s13, 128  ;;  %p103_p1 = scmp.lt.s32.totalorder %s30_s13, %s30_s13 }
   0x5   :  { %p99_p0 = scmp.ne.s32.totalorder %s30_s13, %s98_s16  ;;  %p104_p2 = scmp.lt.s32.totalorder %s98_s16, %s98_s16 }
   0x7   :  { %p105_p3 = por %p104_p2, %p103_p1 }
   0x9   :  { %p106_p4 = pnand %p105_p3, %p99_p0 }
   0xb   :  { %109 = shalt.err (!%p106_p4)
}
   0xc   :  { %32 = dma.hbm_to_vmem [thread:$0]  %s224_s1, 128, %s30_s13, [#allocation6]  }
   0xd   :  { %s118_s19 = scalar_lea.vmem %s17_s15, 256  ;;  %p123_p6 = scmp.lt.s32.totalorder %s17_s15, %s17_s15 }
   0xe   :  { %p119_p5 = scmp.ne.s32.totalorder %s17_s15, %s118_s19  ;;  %p124_p7 = scmp.lt.s32.totalorder %s118_s19, %s118_s19 }
  0x10   :  { %p125_p8 = por %p124_p7, %p123_p6 }
  0x12   :  { %p126_p9 = pnand %p125_p8, %p119_p5 }
  0x14   :  { %129 = shalt.err (!%p126_p9)
}
  0x15   :  { %s178_s20 = smov 128   ;;  %s179_s21 = smov 8  }
  0x16   :  { %22 = dma.hbm_to_vmem [thread:$0]  %s223_s0, 256, %s17_s15, [#allocation3], %s178_s20, %s178_s20, %s179_s21  }
  0x17   :  { %s180_s24 = smov [#allocation7]  }
  0x18   :  { %s38_s25 = sshll.u32 %s180_s24, 4  ;;  %s39_s25 = int_to_ptr.vmem [resolvable:$true] %s38_s25 }
  0x19   :  { %s138_s1 = scalar_lea.vmem %s39_s25, 256  ;;  %p143_p11 = scmp.lt.s32.totalorder %s39_s25, %s39_s25 }
  0x1a   :  { %p139_p10 = scmp.ne.s32.totalorder %s39_s25, %s138_s1  ;;  %p144_p12 = scmp.lt.s32.totalorder %s138_s1, %s138_s1 }
  0x1c   :  { %p145_p13 = por %p144_p12, %p143_p11 }
  0x1e   :  { %p146_p0 = pnand %p145_p13, %p139_p10 }
  0x20   :  { %149 = shalt.err (!%p146_p0)
}
  0x21   :  { %44 = dma.hbm_to_vmem [thread:$0]  %s225_s2, 256, %s39_s25, [#allocation6], %s178_s20, %s178_s20, %s179_s21  }
  0x22   :  { %170 = dma.done.wait [#allocation3], 256  }
  0x23   :  { %171 = vsyncadd [#allocation3], 4294967040 }
  0x24   :  { %172 = dma.done.wait [#allocation6], 384  }
  0x25   :  { %173 = vsyncadd [#allocation6], 4294966912  ;;  %v54_v0 = vld [vmem:[#allocation2] sm:$0xff]  ;;  %v56_v1 = vld [vmem:[#allocation5] sm:$0xff]  ;;  %s181_s0 = smov [#allocation8]   ;;  %vm63_vm0 = vcmask 261120  }
  0x26   :  { %v59_v2 = vld [vmem:[#allocation7] sm:$0xff]  ;;  %v57_v3 = vadd.f32 %v56_v1, %v54_v0  ;;  %v55_v4 = vld [vmem:[#allocation2 + $0x8] sm:$0xff]  ;;  %v60_v5 = vld [vmem:[#allocation7 + $0x8] sm:$0xff]  ;;  %s71_s28 = sshll.u32 %s181_s0, 4  ;;  %s72_s28 = int_to_ptr.vmem [resolvable:$true] %s71_s28 }
  0x27   :  { %v58_v6 = vadd.f32 %v56_v1, %v55_v4  ;;  %s150_s2 = scalar_lea.vmem %s72_s28, 256  ;;  %p155_p2 = scmp.lt.s32.totalorder %s72_s28, %s72_s28 }
  0x28   :  { %v61_v7 = vmul.f32 %v59_v2, %v57_v3  ;;  %p151_p1 = scmp.ne.s32.totalorder %s72_s28, %s150_s2  ;;  %p156_p3 = scmp.lt.s32.totalorder %s150_s2, %s150_s2 }
  0x29   :  { %v62_v8 = vmul.f32 %v60_v5, %v58_v6 }
  0x2a   :  { %64 = vst.msk [vmem:[#allocation8] sm:$0xff] %vm63_vm0, %v61_v7  ;;  %p157_p4 = por %p156_p3, %p155_p2 }
  0x2b   :  { %65 = vst.msk [vmem:[#allocation8 + $0x8] sm:$0xff] %vm63_vm0, %v62_v8 }
  0x2c   :  { %p158_p5 = pnand %p157_p4, %p151_p1 }
  0x2e   :  { %161 = shalt.err (!%p158_p5)
}
  0x2f   :  { %77 = dma.vmem_to_hbm [thread:$0]  %s72_s28, 256, %s226_s3, [#allocation4], %s178_s20, %s178_s20, %s179_s21  }
  0x30   :  { %174 = dma.done.wait [#allocation4], 256  }
  0x31   :  { %175 = vsyncadd [#allocation4], 4294967040 }
  0x32   :  { %81 = vsyncpa [#allocation3], 1 }
  0x33   :  { %82 = vsyncpa [#allocation6], 1 }
  0x34   :  { %83 = vsyncpa [#allocation4], 1 }

</bundles_post_ra>
